<compile_context>
chip_gen: v6e
topology: v6e:2x2x1
jax: 0.10.0
libtpu: 0.0.40
codegen_flags: <defaults>
</compile_context>

<pallas_src>
import functools

import jax
import jax.numpy as jnp
from jax.experimental import pallas as pl
from jax.experimental.pallas import tpu as pltpu


def _deep_embed_kernel(ids_ref,      # VMEM (TM, 1)   int32   token-id tile
                       emb_ref,      # VMEM (Vp, D)   f32     embedding table (resident)
                       w_ref,        # VMEM (L, D, D) bf16    pre-transposed weights (resident)
                       b_ref,        # VMEM (L, 1, D) f32     biases (resident)
                       out_ref,      # VMEM (TM, D)   f32     output tile
                       *, vocab, num_linear, compute_dtype):
    tm = ids_ref.shape[0]
    v_pad = emb_ref.shape[0]

    # --- embedding gather on the MXU via one-hot matmul ---
    ids = jnp.clip(ids_ref[...], 0, vocab - 1)                      # (TM, 1) int32
    col = jax.lax.broadcasted_iota(jnp.int32, (tm, v_pad), 1)       # (TM, Vp)
    one_hot = (col == ids).astype(jnp.float32)                      # (TM, Vp)
    x = jnp.dot(one_hot, emb_ref[...],
                preferred_element_type=jnp.float32)                 # (TM, D) f32

    # --- chained Linear layers (bf16 MXU matmuls, f32 accumulation) ---
    for l in range(num_linear):
        x = jnp.dot(x.astype(compute_dtype), w_ref[l],
                    preferred_element_type=jnp.float32) + b_ref[l]

    out_ref[...] = x.astype(out_ref.dtype)


def deep_embed_forward(token_ids, emb_table, weights_t, biases, *,
                       tm=None, compute_dtype=jnp.bfloat16):
    """token_ids: (batch, seq) int32
       emb_table: (V, D) f32
       weights_t: (L, D, D) f32 -- already transposed to (d_in, d_out)
       biases:    (L, 1, D) f32
       returns:   (batch, seq, D) f32
    """
    batch, seq = token_ids.shape
    V, D = emb_table.shape
    L = weights_t.shape[0]
    assert L >= 1, "num_layers must be >= 2 (at least one Linear layer)"
    assert D % 128 == 0, "d_model must be a multiple of 128 (lane-dense)"

    N = batch * seq

    # Fixed token tile (multiple of 8), never defaulting to N.
    if tm is None:
        tm = min(256, ((N + 7) // 8) * 8)
    assert tm % 8 == 0, "tile size must be a multiple of 8"
    n_pad = ((N + tm - 1) // tm) * tm

    # Pad vocab to a lane-dense multiple of 128 (zero rows, never selected).
    v_pad = ((V + 127) // 128) * 128
    emb_p = emb_table.astype(jnp.float32)
    if v_pad != V:
        emb_p = jnp.pad(emb_p, ((0, v_pad - V), (0, 0)))

    ids_flat = token_ids.reshape(N).astype(jnp.int32)
    if n_pad != N:
        ids_flat = jnp.pad(ids_flat, (0, n_pad - N))
    ids_col = ids_flat.reshape(n_pad, 1)

    w_c = weights_t.astype(compute_dtype)
    b_f = biases.astype(jnp.float32)

    # VMEM budget: resident table + weights + biases, double-buffered id/out
    # tiles, plus intermediates (one-hot and activation), with headroom.
    c_item = jnp.dtype(compute_dtype).itemsize
    vmem_bytes = (v_pad * D * 4
                  + L * D * D * c_item
                  + L * D * 4
                  + 2 * tm * 4
                  + 2 * tm * D * 4
                  + tm * v_pad * 4
                  + 2 * tm * D * 4)
    vmem_limit = min(int(vmem_bytes * 2) + (2 << 20), 64 << 20)

    kernel = functools.partial(_deep_embed_kernel,
                               vocab=V, num_linear=L, compute_dtype=compute_dtype)

    out = pl.pallas_call(
        kernel,
        out_shape=jax.ShapeDtypeStruct((n_pad, D), jnp.float32),
        grid_spec=pltpu.PrefetchScalarGridSpec(
            num_scalar_prefetch=0,
            grid=(n_pad // tm,),
            in_specs=[
                pl.BlockSpec((tm, 1), lambda i: (i, 0)),        # token ids (streamed)
                pl.BlockSpec((v_pad, D), lambda i: (0, 0)),     # emb table (resident)
                pl.BlockSpec((L, D, D), lambda i: (0, 0, 0)),   # weights (resident)
                pl.BlockSpec((L, 1, D), lambda i: (0, 0, 0)),   # biases (resident)
            ],
            out_specs=pl.BlockSpec((tm, D), lambda i: (i, 0)),
        ),
        compiler_params=pltpu.CompilerParams(
            dimension_semantics=("parallel",),   # independent tiles -> megacore on v7x
            vmem_limit_bytes=vmem_limit,
        ),
    )(ids_col, emb_p, w_c, b_f)

    return out[:N].reshape(batch, seq, D)


def _reference(token_ids, emb_table, weights_t, biases, compute_dtype):
    """Same math (bf16 matmul, f32 accumulation) in plain JAX."""
    x = jnp.take(emb_table, token_ids.astype(jnp.int32), axis=0)   # (B, S, D) f32
    for l in range(weights_t.shape[0]):
        x = jnp.dot(x.astype(compute_dtype), weights_t[l].astype(compute_dtype),
                    preferred_element_type=jnp.float32) + biases[l, 0]
    return x


if __name__ == "__main__":
    # DeepEmbed(d_vocab=64, d_model=128, num_layers=2) -> 1 Linear layer.
    d_vocab = 64
    d_model = 128
    num_layers = 2
    L = num_layers - 1
    batch, seq = 2, 8

    key = jax.random.PRNGKey(0)
    k_ids, k_emb, k_w, k_b = jax.random.split(key, 4)

    token_ids = jax.random.randint(k_ids, (batch, seq), 0, d_vocab, dtype=jnp.int32)
    emb_table = jax.random.normal(k_emb, (d_vocab, d_model), dtype=jnp.float32) * 0.02

    # PyTorch nn.Linear weight is (out, in); kernel takes pre-transposed (in, out).
    w_torch_style = jax.random.normal(k_w, (L, d_model, d_model), dtype=jnp.float32) * 0.05
    weights_t = jnp.transpose(w_torch_style, (0, 2, 1))
    biases = jax.random.normal(k_b, (L, 1, d_model), dtype=jnp.float32) * 0.01

    out = deep_embed_forward(token_ids, emb_table, weights_t, biases)
    out = jax.block_until_ready(out)

    ref = _reference(token_ids, emb_table, weights_t, biases, jnp.bfloat16)
    assert out.shape == (batch, seq, d_model)
    assert jnp.allclose(out, ref, atol=1e-3, rtol=1e-2), "mismatch vs reference"

    print("KERNEL_OK")
</pallas_src>

<mosaic_0001>
module attributes {stable_mosaic.version = 11 : i64} {
  func.func @_deep_embed_kernel(%arg0: i32, %arg1: memref<16x1xi32, #tpu.memory_space<vmem>>, %arg2: memref<128x128xf32, #tpu.memory_space<vmem>>, %arg3: memref<1x128x128xbf16, #tpu.memory_space<vmem>>, %arg4: memref<1x1x128xf32, #tpu.memory_space<vmem>>, %arg5: memref<16x128xf32, #tpu.memory_space<vmem>>) attributes {dimension_semantics = [#tpu.dimension_semantics<parallel>], iteration_bounds = array<i64: 1>, scalar_prefetch = 0 : i64, scratch_operands = 0 : i64, tpu.core_type = #tpu.core_type<tc>, window_params = [{transform_indices = @transform_0, window_bounds = array<i64: 16, 1>}, {pipeline_mode = #tpu.pipeline_mode<synchronous>, transform_indices = @transform_1, window_bounds = array<i64: 128, 128>}, {pipeline_mode = #tpu.pipeline_mode<synchronous>, transform_indices = @transform_2, window_bounds = array<i64: 1, 128, 128>}, {pipeline_mode = #tpu.pipeline_mode<synchronous>, transform_indices = @transform_3, window_bounds = array<i64: 1, 1, 128>}, {transform_indices = @transform_4, window_bounds = array<i64: 16, 128>}]} {
    %c0 = arith.constant 0 : index
    %c0_0 = arith.constant 0 : index
    %0 = vector.load %arg1[%c0, %c0_0] : memref<16x1xi32, #tpu.memory_space<vmem>>, vector<16x1xi32>
    %c0_i32 = arith.constant 0 : i32
    %c63_i32 = arith.constant 63 : i32
    %1 = vector.broadcast %c0_i32 : i32 to vector<16x1xi32>
    %2 = arith.maxsi %1, %0 : vector<16x1xi32>
    %3 = vector.broadcast %c63_i32 : i32 to vector<16x1xi32>
    %4 = arith.minsi %3, %2 : vector<16x1xi32>
    %5 = tpu.iota {dimensions = array<i32: 1>} : vector<16x128xi32>
    %6 = vector.broadcast %4 : vector<16x1xi32> to vector<16x128xi32>
    %7 = arith.cmpi eq, %5, %6 : vector<16x128xi32>
    %8 = arith.extui %7 : vector<16x128xi1> to vector<16x128xi32>
    %9 = arith.sitofp %8 : vector<16x128xi32> to vector<16x128xf32>
    %c0_1 = arith.constant 0 : index
    %c0_2 = arith.constant 0 : index
    %10 = vector.load %arg2[%c0_1, %c0_2] : memref<128x128xf32, #tpu.memory_space<vmem>>, vector<128x128xf32>
    %cst = arith.constant dense<0.000000e+00> : vector<16x128xf32>
    %11 = tpu.matmul %9, %10, %cst {dimension_numbers = #tpu.dot_dimension_numbers<[1], [0], [0], [1], [0, 0, 1, 1], [], []>} : vector<16x128xf32>, vector<128x128xf32>, vector<16x128xf32> -> vector<16x128xf32>
    %12 = arith.truncf %11 : vector<16x128xf32> to vector<16x128xbf16>
    %c0_3 = arith.constant 0 : index
    %c0_4 = arith.constant 0 : index
    %c0_5 = arith.constant 0 : index
    %13 = vector.load %arg3[%c0_3, %c0_4, %c0_5] : memref<1x128x128xbf16, #tpu.memory_space<vmem>>, vector<1x128x128xbf16>
    %14 = vector.shape_cast %13 : vector<1x128x128xbf16> to vector<128x128xbf16>
    %cst_6 = arith.constant dense<0.000000e+00> : vector<16x128xf32>
    %15 = tpu.matmul %12, %14, %cst_6 {dimension_numbers = #tpu.dot_dimension_numbers<[1], [0], [0], [1], [0, 0, 1, 1], [], []>} : vector<16x128xbf16>, vector<128x128xbf16>, vector<16x128xf32> -> vector<16x128xf32>
    %c0_7 = arith.constant 0 : index
    %c0_8 = arith.constant 0 : index
    %c0_9 = arith.constant 0 : index
    %16 = vector.load %arg4[%c0_7, %c0_8, %c0_9] : memref<1x1x128xf32, #tpu.memory_space<vmem>>, vector<1x1x128xf32>
    %17 = vector.shape_cast %16 : vector<1x1x128xf32> to vector<1x128xf32>
    %18 = vector.broadcast %17 : vector<1x128xf32> to vector<16x128xf32>
    %19 = arith.addf %15, %18 : vector<16x128xf32>
    %c0_10 = arith.constant 0 : index
    %c0_11 = arith.constant 0 : index
    %20 = vector.load %arg5[%c0_10, %c0_11] : memref<16x128xf32, #tpu.memory_space<vmem>>, vector<16x128xf32>
    tpu.vector_store %arg5[%c0_10, %c0_11], %19 {strides = array<i32>} : memref<16x128xf32, #tpu.memory_space<vmem>>, vector<16x128xf32>,
    return
  }
  func.func @transform_0(%arg0: i32) -> (i32, i32) {
    %c0_i32 = arith.constant 0 : i32
    %c0_i32_0 = arith.constant 0 : i32
    return %arg0, %c0_i32 : i32, i32
  }
  func.func @transform_1(%arg0: i32) -> (i32, i32) {
    %c0_i32 = arith.constant 0 : i32
    %c0_i32_0 = arith.constant 0 : i32
    %c0_i32_1 = arith.constant 0 : i32
    return %c0_i32, %c0_i32_0 : i32, i32
  }
  func.func @transform_2(%arg0: i32) -> (i32, i32, i32) {
    %c0_i32 = arith.constant 0 : i32
    %c0_i32_0 = arith.constant 0 : i32
    %c0_i32_1 = arith.constant 0 : i32
    %c0_i32_2 = arith.constant 0 : i32
    return %c0_i32, %c0_i32_0, %c0_i32_1 : i32, i32, i32
  }
  func.func @transform_3(%arg0: i32) -> (i32, i32, i32) {
    %c0_i32 = arith.constant 0 : i32
    %c0_i32_0 = arith.constant 0 : i32
    %c0_i32_1 = arith.constant 0 : i32
    %c0_i32_2 = arith.constant 0 : i32
    return %c0_i32, %c0_i32_0, %c0_i32_1 : i32, i32, i32
  }
  func.func @transform_4(%arg0: i32) -> (i32, i32) {
    %c0_i32 = arith.constant 0 : i32
    %c0_i32_0 = arith.constant 0 : i32
    return %arg0, %c0_i32 : i32, i32
  }
}

</mosaic_0001>

<bundles_post_ra>
// kernel: tpu_custom_call.1
= control target key start
LH: loop header
LB: loop body
LE: loop exit
PB: predicated region body
PF: predicated region fallthrough
CT: control target
= control target key end

     0   :  { %9 = vsyncpa [#allocation3], 0  ;;  %s545_s0 = inlined_call_operand.vmem [shape: s32[16,1], index: 0, kind: input, shape index: {}]   ;;  %s546_s1 = inlined_call_operand.hbm [shape: f32[128,128], index: 1, kind: input, shape index: {}]   ;;  %s547_s2 = inlined_call_operand.hbm [shape: bf16[1,128,128], index: 2, kind: input, shape index: {}]   ;;  %s548_s3 = inlined_call_operand.vmem [shape: f32[1,1,128], index: 3, kind: input, shape index: {}]   ;;  %s549_s4 = inlined_call_operand.hbm [shape: f32[16,128], index: 4, kind: output, shape index: {}]  }
   0x1   :  { %10 = vsyncpa [#allocation6], 0 }
   0x2   :  { %11 = vsyncpa [#allocation4], 0  ;;  %s476_s15 = smov [#allocation2]  }
   0x3   :  { %s19_s16 = sshll.u32 %s476_s15, 4  ;;  %s20_s16 = int_to_ptr.vmem [resolvable:$true] %s19_s16 }
   0x4   :  { %s418_s17 = scalar_lea.vmem %s20_s16, 2048  ;;  %p423_p1 = scmp.lt.s32.totalorder %s20_s16, %s20_s16 }
   0x5   :  { %p419_p0 = scmp.ne.s32.totalorder %s20_s16, %s418_s17  ;;  %p424_p2 = scmp.lt.s32.totalorder %s418_s17, %s418_s17 }
   0x7   :  { %p425_p3 = por %p424_p2, %p423_p1 }
   0x9   :  { %p426_p4 = pnand %p425_p3, %p419_p0 }
   0xb   :  { %429 = shalt.err (!%p426_p4)
}
   0xc   :  { %s477_s18 = smov 128   ;;  %s478_s19 = smov 8  }
   0xd   :  { %25 = dma.hbm_to_vmem [thread:$0]  %s546_s1, 2048, %s20_s16, [#allocation3], %s477_s18, %s477_s18, %s478_s19  }
   0xe   :  { %s479_s22 = smov [#allocation5]  }
   0xf   :  { %s31_s23 = sshll.u32 %s479_s22, 4  ;;  %s32_s23 = int_to_ptr.vmem [resolvable:$true] %s31_s23 }
  0x10   :  { %s438_s24 = scalar_lea.vmem %s32_s23, 1024  ;;  %p443_p6 = scmp.lt.s32.totalorder %s32_s23, %s32_s23 }
  0x11   :  { %p439_p5 = scmp.ne.s32.totalorder %s32_s23, %s438_s24  ;;  %p444_p7 = scmp.lt.s32.totalorder %s438_s24, %s438_s24 }
  0x13   :  { %p445_p8 = por %p444_p7, %p443_p6 }
  0x15   :  { %p446_p9 = pnand %p445_p8, %p439_p5 }
  0x17   :  { %449 = shalt.err (!%p446_p9)
}
  0x18   :  { %s480_s25 = smov 64   ;;  %s481_s26 = smov 4  }
  0x19   :  { %37 = dma.hbm_to_vmem [thread:$0]  %s547_s2, 1024, %s32_s23, [#allocation6], %s480_s25, %s480_s25, %s481_s26  }
  0x1a   :  { %470 = dma.done.wait [#allocation3], 2048  }
  0x1b   :  { %471 = vsyncadd [#allocation3], 4294965248 }
  0x1c   :  { %472 = dma.done.wait [#allocation6], 1024  }
  0x1d   :  { %473 = vsyncadd [#allocation6], 4294966272  ;;  %v482_v0 = vmov 0   ;;  %v47_v1 = vld [vmem:[%s545_s0] sm:$0xff]  ;;  %v48_v2 = vld [vmem:[%s545_s0 + $0x8] sm:$0xff]  ;;  %v483_v14 = vmov 0.0   ;;  %v57_v31 = vlaneseq }
  0x1e   :  { %401 = vset.pattern.permute.xlu0 %v482_v0  ;;  %v86_v3 = vld [vmem:[#allocation2 + $0x78] sm:$0xff]  ;;  %vm49_vm0 = vcmp.gt.s32.totalorder %v47_v1, 0  ;;  %vm51_vm1 = vcmp.gt.s32.totalorder %v48_v2, 0  ;;  %v85_v4 = vld [vmem:[#allocation2 + $0x70] sm:$0xff]  ;;  %v84_v7 = vld [vmem:[#allocation2 + $0x68] sm:$0xff]  ;;  %370 = vmatprep.subr.bf16.mxu1 %v483_v14  ;;  %v484_v34 = vmov 1.0  }
  0x1f   :  { %335 = vmatprep.subr.mxu0 %v86_v3  ;;  %v50_v5 = vsel %vm49_vm0, %v47_v1, 0  ;;  %v52_v6 = vsel %vm51_vm1, %v48_v2, 0  ;;  %v83_v9 = vld [vmem:[#allocation2 + $0x60] sm:$0xff]  ;;  %v82_v11 = vld [vmem:[#allocation2 + $0x58] sm:$0xff]  ;;  %v81_v13 = vld [vmem:[#allocation2 + $0x50] sm:$0xff]  ;;  %v58_v32 = vand.u32 127, %v57_v31 }
  0x20   :  { %336 = vmatpush3.msra.mxu0 %v86_v3  ;;  %vm53_vm2 = vcmp.lt.s32.totalorder %v50_v5, 63  ;;  %vm55_vm3 = vcmp.lt.s32.totalorder %v52_v6, 63  ;;  %v402_v12 = vld [vmem:[#allocation5 + $0x38] sm:$0xff]   ;;  %v403_v15 = vld [vmem:[#allocation5 + $0x30] sm:$0xff]   ;;  %v80_v16 = vld [vmem:[#allocation2 + $0x48] sm:$0xff]  ;;  %vm485_vm6 = vmmov 0  }
  0x21   :  { %337 = vmatprep.subr.mxu0 %v85_v4  ;;  %v54_v8 = vsel %vm53_vm2, %v50_v5, 63  ;;  %v56_v10 = vsel %vm55_vm3, %v52_v6, 63  ;;  %371 = vmatpush3.bf16.msra.mxu1 %v402_v12  ;;  %v79_v17 = vld [vmem:[#allocation2 + $0x40] sm:$0xff]  ;;  %v404_v18 = vld [vmem:[#allocation5 + $0x28] sm:$0xff]   ;;  %v78_v19 = vld [vmem:[#allocation2 + $0x38] sm:$0xff]  ;;  %s486_s6 = smov [#allocation7]  }
  0x22   :  { %338 = vmatpush3.msra.mxu0 %v85_v4  ;;  %60 = vperm.xlu0 %401, %v54_v8   ;;  %v77_v20 = vld [vmem:[#allocation2 + $0x30] sm:$0xff]  ;;  %v405_v21 = vld [vmem:[#allocation5 + $0x20] sm:$0xff]   ;;  %v76_v22 = vld [vmem:[#allocation2 + $0x28] sm:$0xff]  ;;  %s282_s7 = sshll.u32 %s486_s6, 4  ;;  %s283_s7 = int_to_ptr.vmem [resolvable:$true] %s282_s7 }
  0x23   :  { %339 = vmatprep.subr.mxu0 %v84_v7  ;;  %372 = vmatprep.subr.bf16.mxu1 %v483_v14  ;;  %v75_v23 = vld [vmem:[#allocation2 + $0x20] sm:$0xff]  ;;  %v406_v24 = vld [vmem:[#allocation5 + $0x18] sm:$0xff]   ;;  %v73_v26 = vld [vmem:[#allocation2 + $0x10] sm:$0xff]  ;;  %s450_s8 = scalar_lea.vmem %s283_s7, 256  ;;  %p455_p11 = scmp.lt.s32.totalorder %s283_s7, %s283_s7 }
  0x24   :  { %340 = vmatpush3.msra.mxu0 %v84_v7  ;;  %v74_v25 = vld [vmem:[#allocation2 + $0x18] sm:$0xff]  ;;  %v407_v27 = vld [vmem:[#allocation5 + $0x10] sm:$0xff]   ;;  %v72_v28 = vld [vmem:[#allocation2 + $0x8] sm:$0xff]  ;;  %386 = vmatprep.mubr.msk.bf16.mxu1 %vm485_vm6, %v483_v14  ;;  %p451_p10 = scmp.ne.s32.totalorder %s283_s7, %s450_s8  ;;  %p456_p12 = scmp.lt.s32.totalorder %s450_s8, %s450_s8 }
  0x25   :  { %341 = vmatprep.subr.mxu0 %v83_v9  ;;  %373 = vmatpush3.bf16.msra.mxu1 %v403_v15  ;;  %v71_v29 = vld [vmem:[#allocation2] sm:$0xff]  ;;  %v408_v30 = vld [vmem:[#allocation5 + $0x8] sm:$0xff]  }
  0x26   :  { %342 = vmatpush3.msra.mxu0 %v83_v9  ;;  %63 = vperm.xlu0 %401, %v56_v10   ;;  %v409_v36 = vld [vmem:[#allocation5] sm:$0xff]   ;;  %p457_p13 = por %p456_p12, %p455_p11 }
  0x27   :  { %343 = vmatprep.subr.mxu0 %v82_v11  ;;  %374 = vmatprep.subr.bf16.mxu1 %v483_v14  ;;  %v299_v40 = vld [vmem:[%s548_s3] ss:$0 sm:$0xff] }
  0x28   :  { %344 = vmatpush3.msra.mxu0 %v82_v11  ;;  %p458_p0 = pnand %p457_p13, %p451_p10 }
  0x29   :  { %345 = vmatprep.subr.mxu0 %v81_v13  ;;  %375 = vmatpush3.bf16.msra.mxu1 %v404_v18 }
  0x2a   :  { %346 = vmatpush3.msra.mxu0 %v81_v13  ;;  %376 = vmatprep.subr.bf16.mxu1 %v483_v14 }
  0x2b   :  { %347 = vmatprep.subr.mxu0 %v80_v16 }
  0x2c   :  { %348 = vmatpush3.msra.mxu0 %v80_v16 }
  0x2d   :  { %349 = vmatprep.subr.mxu0 %v79_v17  ;;  %377 = vmatpush3.bf16.msra.mxu1 %v405_v21 }
  0x2e   :  { %350 = vmatpush3.msra.mxu0 %v79_v17  ;;  %378 = vmatprep.subr.bf16.mxu1 %v483_v14 }
  0x2f   :  { %351 = vmatprep.subr.mxu0 %v78_v19 }
  0x30   :  { %352 = vmatpush3.msra.mxu0 %v78_v19 }
  0x31   :  { %353 = vmatprep.subr.mxu0 %v77_v20  ;;  %379 = vmatpush3.bf16.msra.mxu1 %v406_v24 }
  0x32   :  { %354 = vmatpush3.msra.mxu0 %v77_v20  ;;  %380 = vmatprep.subr.bf16.mxu1 %v483_v14 }
  0x33   :  { %355 = vmatprep.subr.mxu0 %v76_v22 }
  0x34   :  { %356 = vmatpush3.msra.mxu0 %v76_v22 }
  0x35   :  { %357 = vmatprep.subr.mxu0 %v75_v23  ;;  %381 = vmatpush3.bf16.msra.mxu1 %v407_v27 }
  0x36   :  { %358 = vmatpush3.msra.mxu0 %v75_v23  ;;  %382 = vmatprep.subr.bf16.mxu1 %v483_v14 }
  0x37   :  { %359 = vmatprep.subr.mxu0 %v74_v25 }
  0x38   :  { %360 = vmatpush3.msra.mxu0 %v74_v25 }
  0x39   :  { %361 = vmatprep.subr.mxu0 %v73_v26  ;;  %383 = vmatpush3.bf16.msra.mxu1 %v408_v30 }
  0x3a   :  { %362 = vmatpush3.msra.mxu0 %v73_v26  ;;  %384 = vmatprep.subr.bf16.mxu1 %v483_v14 }
  0x3b   :  { %363 = vmatprep.subr.mxu0 %v72_v28 }
  0x3c   :  { %364 = vmatpush3.msra.mxu0 %v72_v28 }
  0x3d   :  { %365 = vmatprep.subr.mxu0 %v71_v29  ;;  %385 = vmatpush3.bf16.msra.mxu1 %v409_v36 }
  0x3e   :  { %366 = vmatpush3.msra.mxu0 %v71_v29 }
  0x9d   :  { %v61_v33 = vpop.permute.xlu0 %60 }
  0x9e   :  { %vm65_vm4 = vcmp.eq.s32.totalorder %v58_v32, %v61_v33 }
  0x9f   :  { %367 = vmatprep.mubr.msk.f32.mxu0 %vm65_vm4, %v484_v34 }
  0xa1   :  { %v64_v35 = vpop.permute.xlu0 %63 }
  0xa2   :  { %vm66_vm5 = vcmp.eq.s32.totalorder %v58_v32, %v64_v35 }
  0xa3   :  { %368 = vmatmul.mubr.msk.f32.vlgmr.msra.gmra.mxu0 %vm66_vm5, %v484_v34 }
 0x163   :  { %v369_v37 = vpop.f32.mrf.mxu0 }
 0x165   :  { %v153_v38 = vpop.f32.mrf.mxu0 }
 0x166   :  { %v162_v39 = vpack.c.bf16 %v369_v37, %v153_v38 }
 0x168   :  { %387 = vmatmul.mubr.bf16.vlgmr.msra.gmra.mxu1 %v162_v39 }
 0x228   :  { %v268_v41 = vpop.f32.mrf.mxu1 }
 0x229   :  { %v269_v42 = vadd.f32 %v299_v40, %v268_v41 }
 0x22a   :  { %v388_v43 = vpop.f32.mrf.mxu1 }
 0x22b   :  { %275 = vst [vmem:[#allocation7] sm:$0xff] %v269_v42 }
 0x22c   :  { %v271_v44 = vpop.f32.mrf.mxu1 }
 0x22d   :  { %v272_v45 = vadd.f32 %v299_v40, %v271_v44 }
 0x22e   :  { %v389_v46 = vpop.f32.mrf.mxu1 }
 0x22f   :  { %276 = vst [vmem:[#allocation7 + $0x8] sm:$0xff] %v272_v45 }
 0x230   :  { %461 = shalt.err (!%p458_p0)
}
 0x231   :  { %288 = dma.vmem_to_hbm [thread:$0]  %s283_s7, 256, %s549_s4, [#allocation4], %s477_s18, %s477_s18, %s478_s19  }
 0x232   :  { %474 = dma.done.wait [#allocation4], 256  }
 0x233   :  { %475 = vsyncadd [#allocation4], 4294967040 }
 0x234   :  { %292 = vsyncpa [#allocation3], 1 }
 0x235   :  { %293 = vsyncpa [#allocation6], 1 }
 0x236   :  { %294 = vsyncpa [#allocation4], 1 }

</bundles_post_ra>
